<compile_context>
chip_gen: v7x
topology: tpu7x:2x2x1
jax: 0.10.0
libtpu: 0.0.40
codegen_flags: <defaults>
</compile_context>

<pallas_src>
import jax
import jax.numpy as jnp
from jax import lax
from jax.experimental import pallas as pl
from jax.experimental.pallas import tpu as pltpu


def _round_up(x: int, m: int) -> int:
    return ((x + m - 1) // m) * m


def _linear_kernel(x_ref, w_ref, b_ref, o_ref):
    # x_ref: (TM, H)      bf16 activations (one M tile)
    # w_ref: (N_PAD, H)   bf16 weight, native (num_labels, hidden) layout, VMEM-resident
    # b_ref: (1, N_PAD)   f32 bias, VMEM-resident
    # o_ref: (TM, N_PAD)  logits tile (output dtype)
    acc = lax.dot_general(
        x_ref[...], w_ref[...],
        dimension_numbers=(((1,), (1,)), ((), ())),   # contract the shared hidden dim
        preferred_element_type=jnp.float32)
    o_ref[...] = (acc + b_ref[...].astype(jnp.float32)).astype(o_ref.dtype)


def _vmem_budget_bytes() -> int:
    # ~70% of per-core VMEM (64 MiB on v7x, 128 MiB on v5e/v6e) — explicit
    # headroom for compiler scratch/spills so the 2-deep pipeline stays intact.
    try:
        cap = int(pltpu.get_tpu_info().vmem_capacity_bytes)
    except Exception:
        cap = 64 * 1024 * 1024   # conservative fallback (v7x per-TC VMEM)
    return max(32 * 1024 * 1024, int(cap * 0.7))


@jax.jit
def linear_decoder_forward(x, weight, bias):
    """x: (batch, seq, hidden); weight: (num_labels, hidden); bias: (num_labels,)."""
    batch, seq, hidden = x.shape
    num_labels = weight.shape[0]
    m = batch * seq
    out_dtype = x.dtype
    compute_dtype = jnp.bfloat16

    # ---- Lane-dense label padding (weight/bias are tiny; x is NOT padded) ----
    n_pad = _round_up(num_labels, 128)
    w = weight.astype(compute_dtype)
    b = bias.astype(jnp.float32)
    if n_pad != num_labels:
        w = jnp.pad(w, ((0, n_pad - num_labels), (0, 0)))
        b = jnp.pad(b, ((0, n_pad - num_labels),))
    b2d = b.reshape(1, n_pad)

    # Free reshape (contiguous) + bf16 cast; no HBM pad-copy of the activations.
    x2d = x.reshape(m, hidden).astype(compute_dtype)

    # ---- Tile sizing: double-buffered x/out tiles + resident W within budget --
    x_bytes = jnp.dtype(compute_dtype).itemsize
    o_bytes = jnp.dtype(out_dtype).itemsize
    budget = _vmem_budget_bytes()
    fixed = 2 * n_pad * hidden * x_bytes + 2 * n_pad * 4        # resident weight + bias buffers
    per_row = 2 * hidden * x_bytes + 2 * n_pad * o_bytes        # dbl-buffered x row + out row
    # TODO(synk): if the classifier weight alone exceeds the VMEM budget, fall
    # back to an N-tiled grid with N innermost; typical decoder heads never hit this.
    avail = max(per_row * 16, budget - fixed)
    tm = min(1024, (avail // per_row) // 16 * 16, _round_up(m, 16))
    tm = max(16, int(tm))
    m_tiles = pl.cdiv(m, tm)

    cost = pl.CostEstimate(
        flops=2 * m * hidden * n_pad,
        transcendentals=0,
        bytes_accessed=(m * hidden * x_bytes        # x streamed exactly once
                        + n_pad * hidden * x_bytes  # weight read once (resident)
                        + n_pad * 4                 # bias
                        + m * n_pad * o_bytes))     # logits written once

    out_padded = pl.pallas_call(
        _linear_kernel,
        out_shape=jax.ShapeDtypeStruct((m, n_pad), out_dtype),
        grid_spec=pltpu.PrefetchScalarGridSpec(
            num_scalar_prefetch=0,
            grid=(m_tiles,),
            in_specs=[
                pl.BlockSpec((tm, hidden), lambda i: (i, 0)),     # activations: streamed once
                pl.BlockSpec((n_pad, hidden), lambda i: (0, 0)),  # weight: VMEM-resident
                pl.BlockSpec((1, n_pad), lambda i: (0, 0)),       # bias: VMEM-resident
            ],
            out_specs=pl.BlockSpec((tm, n_pad), lambda i: (i, 0)),
        ),
        compiler_params=pltpu.CompilerParams(
            dimension_semantics=("parallel",),      # v7x megacore shards M across its 2 TCs
            vmem_limit_bytes=budget),
        cost_estimate=cost,
    )(x2d, w, b2d)

    # Padded label columns carry zero weight & zero bias -> exactly 0; slice off.
    return out_padded[:, :num_labels].reshape(batch, seq, num_labels)


if __name__ == "__main__":
    # Small shapes consistent with the module: (batch, seq, hidden) activations.
    batch, seq, hidden, num_labels = 2, 8, 32, 16

    key = jax.random.PRNGKey(0)
    kx, kw, kb = jax.random.split(key, 3)

    x = jax.random.normal(kx, (batch, seq, hidden), dtype=jnp.float32)

    # Deterministic PyTorch-Linear-style init: U(-1/sqrt(H), 1/sqrt(H)).
    bound = 1.0 / (hidden ** 0.5)
    weight = jax.random.uniform(kw, (num_labels, hidden), dtype=jnp.float32,
                                minval=-bound, maxval=bound)
    bias = jax.random.uniform(kb, (num_labels,), dtype=jnp.float32,
                              minval=-bound, maxval=bound)

    out = linear_decoder_forward(x, weight, bias)
    out = jax.block_until_ready(out)

    # Cross-check against plain-JAX f32 reference (bf16 inputs + f32 accumulation
    # in the kernel -> relaxed tolerance).
    ref = x @ weight.T + bias
    assert out.shape == (batch, seq, num_labels)
    assert jnp.allclose(out, ref, atol=2e-2, rtol=2e-2), \
        float(jnp.max(jnp.abs(out - ref)))

    print("KERNEL_OK")
</pallas_src>

<mosaic_0001>
module attributes {stable_mosaic.version = 11 : i64} {
  func.func @_linear_kernel(%arg0: i32, %arg1: memref<16x32xbf16, #tpu.memory_space<vmem>>, %arg2: memref<128x32xbf16, #tpu.memory_space<vmem>>, %arg3: memref<1x128xf32, #tpu.memory_space<vmem>>, %arg4: memref<16x128xf32, #tpu.memory_space<vmem>>) attributes {dimension_semantics = [#tpu.dimension_semantics<parallel>], iteration_bounds = array<i64: 1>, scalar_prefetch = 0 : i64, scratch_operands = 0 : i64, tpu.core_type = #tpu.core_type<tc>, window_params = [{transform_indices = @transform_0, window_bounds = array<i64: 16, 32>}, {pipeline_mode = #tpu.pipeline_mode<synchronous>, transform_indices = @transform_1, window_bounds = array<i64: 128, 32>}, {pipeline_mode = #tpu.pipeline_mode<synchronous>, transform_indices = @transform_2, window_bounds = array<i64: 1, 128>}, {transform_indices = @transform_3, window_bounds = array<i64: 16, 128>}]} {
    %c0 = arith.constant 0 : index
    %c0_0 = arith.constant 0 : index
    %0 = vector.load %arg1[%c0, %c0_0] : memref<16x32xbf16, #tpu.memory_space<vmem>>, vector<16x32xbf16>
    %c0_1 = arith.constant 0 : index
    %c0_2 = arith.constant 0 : index
    %1 = vector.load %arg2[%c0_1, %c0_2] : memref<128x32xbf16, #tpu.memory_space<vmem>>, vector<128x32xbf16>
    %cst = arith.constant dense<0.000000e+00> : vector<16x128xf32>
    %2 = tpu.matmul %0, %1, %cst {dimension_numbers = #tpu.dot_dimension_numbers<[1], [1], [0], [0], [0, 0, 1, 0], [], []>} : vector<16x32xbf16>, vector<128x32xbf16>, vector<16x128xf32> -> vector<16x128xf32>
    %c0_3 = arith.constant 0 : index
    %c0_4 = arith.constant 0 : index
    %3 = vector.load %arg3[%c0_3, %c0_4] : memref<1x128xf32, #tpu.memory_space<vmem>>, vector<1x128xf32>
    %4 = vector.broadcast %3 : vector<1x128xf32> to vector<16x128xf32>
    %5 = arith.addf %2, %4 : vector<16x128xf32>
    %c0_5 = arith.constant 0 : index
    %c0_6 = arith.constant 0 : index
    %6 = vector.load %arg4[%c0_5, %c0_6] : memref<16x128xf32, #tpu.memory_space<vmem>>, vector<16x128xf32>
    tpu.vector_store %arg4[%c0_5, %c0_6], %5 {strides = array<i32>} : memref<16x128xf32, #tpu.memory_space<vmem>>, vector<16x128xf32>,
    return
  }
  func.func @transform_0(%arg0: i32) -> (i32, i32) {
    %c0_i32 = arith.constant 0 : i32
    %c0_i32_0 = arith.constant 0 : i32
    return %arg0, %c0_i32 : i32, i32
  }
  func.func @transform_1(%arg0: i32) -> (i32, i32) {
    %c0_i32 = arith.constant 0 : i32
    %c0_i32_0 = arith.constant 0 : i32
    %c0_i32_1 = arith.constant 0 : i32
    return %c0_i32, %c0_i32_0 : i32, i32
  }
  func.func @transform_2(%arg0: i32) -> (i32, i32) {
    %c0_i32 = arith.constant 0 : i32
    %c0_i32_0 = arith.constant 0 : i32
    %c0_i32_1 = arith.constant 0 : i32
    return %c0_i32, %c0_i32_0 : i32, i32
  }
  func.func @transform_3(%arg0: i32) -> (i32, i32) {
    %c0_i32 = arith.constant 0 : i32
    %c0_i32_0 = arith.constant 0 : i32
    return %arg0, %c0_i32 : i32, i32
  }
}

</mosaic_0001>

<bundles_post_ra>
// kernel: linear_decoder_forward.1
= control target key start
LH: loop header
LB: loop body
LE: loop exit
PB: predicated region body
PF: predicated region fallthrough
CT: control target
= control target key end

     0   :  { %vm85_vm0 = vcmask 261120   ;;  %v211_v0 = vmov 0.0   ;;  %vm212_vm1 = vmmov 0   ;;  %s278_s1 = inlined_call_operand.vmem [shape: bf16[128,32], index: 1, kind: input, shape index: {}]   ;;  %s279_s0 = inlined_call_operand.vmem [shape: bf16[16,32], index: 0, kind: input, shape index: {}]   ;;  %s280_s2 = inlined_call_operand.vmem [shape: f32[1,128], index: 2, kind: input, shape index: {}]   ;;  %s281_s3 = inlined_call_operand.vmem [shape: f32[16,128], index: 3, kind: output, shape index: {}]  }
   0x1   :  { %180 = vmatprep.subr.bf16.mxu0 %v211_v0  ;;  %v202_v1 = vld [vmem:[%s278_s1] sm:$0xff]   ;;  %196 = vmatprep.mubr.msk.bf16.mxu0 %vm212_vm1, %v211_v0  ;;  %v203_v3 = vld [vmem:[%s278_s1 + $0x8] sm:$0xff]   ;;  %v204_v5 = vld [vmem:[%s278_s1 + $0x10] sm:$0xff]  }
   0x2   :  { %v90_v2 = vsel %vm85_vm0, %v202_v1, 0  ;;  %v93_v4 = vsel %vm85_vm0, %v203_v3, 0  ;;  %v96_v6 = vsel %vm85_vm0, %v204_v5, 0  ;;  %v205_v7 = vld [vmem:[%s278_s1 + $0x18] sm:$0xff]   ;;  %v206_v9 = vld [vmem:[%s278_s1 + $0x20] sm:$0xff]   ;;  %v207_v11 = vld [vmem:[%s278_s1 + $0x28] sm:$0xff]  }
   0x3   :  { %181 = vmatpush3.bf16.xpose.msra.mxu0 %v90_v2  ;;  %v99_v8 = vsel %vm85_vm0, %v205_v7, 0  ;;  %v102_v10 = vsel %vm85_vm0, %v206_v9, 0  ;;  %v105_v12 = vsel %vm85_vm0, %v207_v11, 0  ;;  %v208_v13 = vld [vmem:[%s278_s1 + $0x30] sm:$0xff]   ;;  %v209_v15 = vld [vmem:[%s278_s1 + $0x38] sm:$0xff]   ;;  %v210_v17 = vld [vmem:[%s279_s0] sm:$0xff]  }
   0x4   :  { %182 = vmatprep.subr.bf16.mxu0 %v211_v0  ;;  %v108_v14 = vsel %vm85_vm0, %v208_v13, 0  ;;  %v111_v16 = vsel %vm85_vm0, %v209_v15, 0  ;;  %v160_v18 = vld [vmem:[%s280_s2] ss:$0 sm:$0xff] }
   0xb   :  { %183 = vmatpush3.bf16.xpose.msra.mxu0 %v93_v4 }
   0xc   :  { %184 = vmatprep.subr.bf16.mxu0 %v211_v0 }
  0x13   :  { %185 = vmatpush3.bf16.xpose.msra.mxu0 %v96_v6 }
  0x14   :  { %186 = vmatprep.subr.bf16.mxu0 %v211_v0 }
  0x1b   :  { %187 = vmatpush3.bf16.xpose.msra.mxu0 %v99_v8 }
  0x1c   :  { %188 = vmatprep.subr.bf16.mxu0 %v211_v0 }
  0x23   :  { %189 = vmatpush3.bf16.xpose.msra.mxu0 %v102_v10 }
  0x24   :  { %190 = vmatprep.subr.bf16.mxu0 %v211_v0 }
  0x2b   :  { %191 = vmatpush3.bf16.xpose.msra.mxu0 %v105_v12 }
  0x2c   :  { %192 = vmatprep.subr.bf16.mxu0 %v211_v0 }
  0x33   :  { %193 = vmatpush3.bf16.xpose.msra.mxu0 %v108_v14 }
  0x34   :  { %194 = vmatprep.subr.bf16.mxu0 %v211_v0 }
  0x3b   :  { %195 = vmatpush3.bf16.xpose.msra.mxu0 %v111_v16 }
  0x42   :  { %197 = vmatmul.mubr.msk.bf16.vlgmr.msra.gmra.mrb[0].mxu0 %vm85_vm0, %v210_v17 }
 0x115   :  { %v147_v19 = vpop.f32.mrb[0].mxu0 }
 0x116   :  { %v148_v20 = vadd.f32 %v160_v18, %v147_v19  ;;  %v198_v21 = vpop.f32.mrb[1].mxu0 }
 0x117   :  { %v150_v22 = vpop.f32.mrb[2].mxu0 }
 0x118   :  { %154 = vst [vmem:[%s281_s3] sm:$0xff] %v148_v20  ;;  %v151_v23 = vadd.f32 %v160_v18, %v150_v22  ;;  %v199_v24 = vpop.f32.mrb[3].mxu0 }
 0x11a   :  { %155 = vst [vmem:[%s281_s3 + $0x8] sm:$0xff] %v151_v23 }

</bundles_post_ra>
